<compile_context>
chip_gen: v6e
topology: v6e:2x2x1
jax: 0.10.0
libtpu: 0.0.40
codegen_flags: <defaults>
</compile_context>

<pallas_src>
import functools

import jax
import jax.numpy as jnp
from jax import lax
from jax.experimental import pallas as pl
from jax.experimental.pallas import tpu as pltpu


# --------------------------------------------------------------------------------------
# Kernel
# --------------------------------------------------------------------------------------
def _msa_flash_kernel(needs_mask, n_valid, tk, exp_dtype,
                      xq_ref, kt_ref, v_ref, wm_ref, bm_ref, gamma_ref,
                      o_ref, q_s, m_s, l_s, acc_s):
    """One (batch, query-tile, kv-tile) grid step.

    xq_ref : (1, C,  tq) bf16   query/residual block (resident across the kv loop)
    kt_ref : (1, tk, Cq) bf16   pre-transposed key stream (Cq = C fused / C//8 direct)
    v_ref  : (1, C,  tk) bf16   precomputed value stream
    wm_ref : (Cq, C)     bf16   Wk^T Wq (fused) or Wq (direct)
    bm_ref : (Cq, 1)     f32    Wk^T bq (fused) or bq (direct)
    """
    ki = pl.program_id(2)

    # ---- init for a new (batch, query tile): project queries once, reset stats.
    @pl.when(ki == 0)
    def _init():
        qm = jnp.dot(wm_ref[...], xq_ref[0],
                     preferred_element_type=jnp.float32) + bm_ref[...]     # (Cq, tq)
        q_s[...] = qm.astype(q_s.dtype)
        m_s[...] = jnp.full_like(m_s, -jnp.inf)
        l_s[...] = jnp.zeros_like(l_s)
        acc_s[...] = jnp.zeros_like(acc_s)

    # ---- per kv tile: energy^T, online softmax, V @ p accumulation (all MXU-native).
    s_t = jnp.dot(kt_ref[0], q_s[...],
                  preferred_element_type=jnp.float32)                       # (tk, tq)
    if needs_mask:
        # Padded (out-of-range) keys are pushed to -1e30 so they get zero weight.
        key_idx = ki * tk + lax.broadcasted_iota(jnp.int32, (tk, 1), 0)
        s_t = jnp.where(key_idx < n_valid, s_t, -1e30)

    m_prev = m_s[...]                                                       # (1, tq)
    m_new = jnp.maximum(m_prev, jnp.max(s_t, axis=0, keepdims=True))
    alpha = jnp.exp(m_prev - m_new)                                         # (1, tq)
    p = jnp.exp((s_t - m_new).astype(exp_dtype))                            # (tk, tq)
    l_s[...] = alpha * l_s[...] + jnp.sum(p.astype(jnp.float32),
                                          axis=0, keepdims=True)
    pv = jnp.dot(v_ref[0], p.astype(jnp.bfloat16),
                 preferred_element_type=jnp.float32)                        # (C, tq)
    acc_s[...] = alpha * acc_s[...] + pv
    m_s[...] = m_new

    # ---- finalize on the last kv tile: normalize, residual, lane-dense store.
    @pl.when(ki == pl.num_programs(2) - 1)
    def _finalize():
        inv_l = pl.reciprocal(l_s[...], approx=True)                        # (1, tq) EUP
        out = acc_s[...] * inv_l                                            # (C, tq)
        o_ref[0] = (gamma_ref[0] * out
                    + xq_ref[0].astype(jnp.float32)).astype(o_ref.dtype)


# --------------------------------------------------------------------------------------
# Planning helpers
# --------------------------------------------------------------------------------------
def _device_kind():
    try:
        return jax.devices()[0].device_kind.lower()
    except Exception:
        return ""


def _pick_div(n_pad, target):
    """Largest multiple of 128 that is <= target and divides n_pad (n_pad % 128 == 0)."""
    t = max(128, min(target - target % 128, n_pad))
    while n_pad % t:
        t -= 128
    return t


def _plan_tiles(n, q_target, kv_target):
    """Return (n_pad, tq, tk): pad N to a multiple of 128 and tile it (masked tail),
    unless a single unpadded block already fits both tile targets."""
    q_target = max(128, q_target - q_target % 128)
    kv_target = max(128, kv_target - kv_target % 128)
    if n <= min(q_target, kv_target):
        return n, n, n                      # single block per axis, no padding/masking
    n_pad = -(-n // 128) * 128
    return n_pad, _pick_div(n_pad, q_target), _pick_div(n_pad, kv_target)


def _kv_block_spec(shape, index_map, bufs):
    """kv-stream BlockSpec; request deeper buffering on low-bandwidth (v5-class) chips."""
    if bufs != 2:
        try:
            return pl.BlockSpec(shape, index_map, pipeline_mode=pl.Buffered(bufs))
        except Exception:
            pass
    return pl.BlockSpec(shape, index_map)


def _vmem_bytes(C, Cq, tq, tk, out_itemsize, kv_bufs):
    b = 0
    b += 2 * (C * tq * 2)                   # xq block (bf16, double buffered)
    b += kv_bufs * (tk * Cq * 2)            # key stream block
    b += kv_bufs * (C * tk * 2)             # value stream block
    b += 2 * (C * tq * out_itemsize)        # output block
    b += 2 * (Cq * C * 2 + Cq * 4)          # weights + bias
    b += Cq * tq * 2                        # q scratch (bf16)
    b += 2 * 8 * tq * 4                     # m, l scratch (sublane padded)
    b += C * tq * 4                         # accumulator
    return b


# --------------------------------------------------------------------------------------
# Wrapper
# --------------------------------------------------------------------------------------
def multi_scale_attention_pallas(x_nchw, wq, bq, wk, bk, wv, bv, gamma,
                                 *, q_tile=1024, kv_tile=1024):
    """x_nchw: (B, C, H, W).  wq/wk: (C//8, C), wv: (C, C), biases matching,
    gamma: (1,).  Returns (B, C, H, W) — same semantics as the torch module."""
    B, C, H, W = x_nchw.shape
    N = H * W
    C8 = wq.shape[0]
    f32, bf16 = jnp.float32, jnp.bfloat16

    kind = _device_kind()
    pre_v6 = any(t in kind for t in ("v2", "v3", "v4", "v5"))
    is_v7 = ("v7" in kind) or ("tpu7" in kind)

    # Generation-aware knobs.
    fuse_qk = C <= (128 if pre_v6 else 256)      # fused Wk^T Wq energy path threshold
    exp_dtype = f32 if pre_v6 else bf16          # bf16 EUP exp only on v6e/v7x
    kv_bufs = 3 if pre_v6 else 2                 # deeper kv pipeline on v5-class HBM

    n_pad, tq, tk = _plan_tiles(N, q_tile, kv_tile)
    # v7x megacore: ensure the two "parallel" axes expose >= 2 units of work.
    if B == 1 and n_pad % 128 == 0 and n_pad >= 256 and n_pad // tq < 2:
        tq = _pick_div(n_pad, n_pad // 2)
    nq, nk = n_pad // tq, n_pad // tk
    needs_mask = n_pad != N

    x_bcn = x_nchw.reshape(B, C, N)              # free reshape: NCHW -> (B, C, H*W)
    x32 = x_bcn.astype(f32)
    xb = x_bcn.astype(bf16)                      # bf16 stream: halves kv HBM traffic

    # Value projection computed ONCE (f32 matmul, bf16 storage), streamed into kernel.
    v_bcn = (jnp.einsum("oc,bcn->bon", wv.astype(f32), x32)
             + bv.astype(f32)[None, :, None]).astype(bf16)                   # (B, C, N)

    if fuse_qk:
        # energy[i,j] = (Wk^T Wq x_i + Wk^T bq)^T x_j  (row-constant terms cancel in the
        # row-wise softmax -> identical attention to the direct q/k path).
        wm = jnp.dot(wk.astype(f32).T, wq.astype(f32)).astype(bf16)          # (C, C)
        bm = jnp.dot(wk.astype(f32).T, bq.astype(f32)).reshape(C, 1)         # (C, 1)
        kt = jnp.transpose(xb, (0, 2, 1))        # (B, N, C) key stream (MXU-native)
        cq = C
    else:
        wm = wq.astype(bf16)                                                  # (C8, C)
        bm = bq.astype(f32).reshape(C8, 1)
        kt = (jnp.einsum("oc,bcn->bno", wk.astype(f32), x32)
              + bk.astype(f32)[None, None, :]).astype(bf16)                   # (B, N, C8)
        cq = C8

    if needs_mask:
        pad = n_pad - N
        xb = jnp.pad(xb, ((0, 0), (0, 0), (0, pad)))
        v_bcn = jnp.pad(v_bcn, ((0, 0), (0, 0), (0, pad)))
        kt = jnp.pad(kt, ((0, 0), (0, pad), (0, 0)))

    gamma_s = gamma.astype(f32).reshape(1)

    est = _vmem_bytes(C, cq, tq, tk, jnp.dtype(x_nchw.dtype).itemsize, kv_bufs)
    cap = (64 if is_v7 else 128) << 20
    vmem_limit = min(int(0.85 * cap), max(32 << 20, int(1.5 * est) + (8 << 20)))

    kernel = functools.partial(_msa_flash_kernel, needs_mask, N, tk, exp_dtype)

    out = pl.pallas_call(
        kernel,
        out_shape=jax.ShapeDtypeStruct((B, C, n_pad), x_nchw.dtype),
        grid_spec=pltpu.PrefetchScalarGridSpec(
            num_scalar_prefetch=0,
            grid=(B, nq, nk),
            in_specs=[
                pl.BlockSpec((1, C, tq), lambda b, qi, ki: (b, 0, qi)),   # x query/residual
                _kv_block_spec((1, tk, cq), lambda b, qi, ki: (b, ki, 0), kv_bufs),  # keys^T
                _kv_block_spec((1, C, tk), lambda b, qi, ki: (b, 0, ki), kv_bufs),   # values
                pl.BlockSpec((cq, C), lambda b, qi, ki: (0, 0)),          # Wm (VMEM resident)
                pl.BlockSpec((cq, 1), lambda b, qi, ki: (0, 0)),          # bias
                pl.BlockSpec(memory_space=pltpu.SMEM),                    # gamma (scalar)
            ],
            out_specs=pl.BlockSpec((1, C, tq), lambda b, qi, ki: (b, 0, qi)),
            scratch_shapes=[
                pltpu.VMEM((cq, tq), bf16),        # projected queries (reused over kv)
                pltpu.VMEM((1, tq), jnp.float32),  # running max m  (lane-dense)
                pltpu.VMEM((1, tq), jnp.float32),  # running sum l  (lane-dense)
                pltpu.VMEM((C, tq), jnp.float32),  # output accumulator (lane-dense)
            ],
        ),
        compiler_params=pltpu.CompilerParams(
            dimension_semantics=("parallel", "parallel", "arbitrary"),
            vmem_limit_bytes=vmem_limit,
        ),
    )(xb, kt, v_bcn, wm, bm, gamma_s)

    return out[:, :, :N].reshape(B, C, H, W)


# --------------------------------------------------------------------------------------
# Pure-JAX reference + tests
# --------------------------------------------------------------------------------------
def _reference(x_nchw, wq, bq, wk, bk, wv, bv, gamma):
    """f32 reference mirroring the torch forward exactly."""
    B, C, H, W = x_nchw.shape
    N = H * W
    x = x_nchw.reshape(B, C, N)
    q = jnp.einsum("oc,bcn->bon", wq, x) + bq[None, :, None]      # (B, C//8, N)
    k = jnp.einsum("oc,bcn->bon", wk, x) + bk[None, :, None]      # (B, C//8, N)
    v = jnp.einsum("oc,bcn->bon", wv, x) + bv[None, :, None]      # (B, C, N)
    energy = jnp.einsum("bci,bcj->bij", q, k)                     # (B, N, N)
    attn = jax.nn.softmax(energy, axis=-1)
    out = jnp.einsum("bcj,bij->bci", v, attn)                     # (B, C, N)
    out = gamma[0] * out + x
    return out.reshape(B, C, H, W)


if __name__ == "__main__":
    def run_case(B, C, H, W, key, q_tile=1024, kv_tile=1024, tol=3e-2):
        C8 = max(C // 8, 1)
        ks = jax.random.split(key, 7)
        x = jax.random.normal(ks[0], (B, C, H, W), dtype=jnp.float32)
        scale = 0.1 if C <= 64 else (0.03 if C <= 256 else 0.02)
        wq = jax.random.normal(ks[1], (C8, C), dtype=jnp.float32) * scale
        bq = jax.random.normal(ks[2], (C8,), dtype=jnp.float32) * scale
        wk = jax.random.normal(ks[3], (C8, C), dtype=jnp.float32) * scale
        bk = jax.random.normal(ks[4], (C8,), dtype=jnp.float32) * scale
        wv = jax.random.normal(ks[5], (C, C), dtype=jnp.float32) * scale
        bv = jax.random.normal(ks[6], (C,), dtype=jnp.float32) * scale
        # torch initializes gamma to 0 (out == x); use a nonzero value so the attention
        # path actually contributes in this synthetic test.
        gamma = jnp.array([0.5], dtype=jnp.float32)

        out = multi_scale_attention_pallas(x, wq, bq, wk, bk, wv, bv, gamma,
                                           q_tile=q_tile, kv_tile=kv_tile)
        out = jax.block_until_ready(out)
        ref = _reference(x, wq, bq, wk, bk, wv, bv, gamma)
        assert out.shape == (B, C, H, W)
        err = jnp.max(jnp.abs(out - ref))
        # bf16 MXU matmuls / bf16 streams / approx reciprocal => loosened tolerance.
        assert jnp.allclose(out, ref, atol=tol, rtol=tol), \
            f"mismatch B={B} C={C} H={H} W={W}: max|diff|={err}"

    key = jax.random.PRNGKey(0)
    k1, k2, k3, k4, k5 = jax.random.split(key, 5)
    # fused Wk^T Wq path, single-tile grid
    run_case(2, 32, 8, 8, k1)
    # fused path with a real multi-tile flash grid (N=256, tq=tk=128, grid=(2,2,2))
    run_case(2, 32, 16, 16, k2, q_tile=128, kv_tile=128)
    # C=256: fused on v6e/v7x (256-deep MXU), direct q/k projection on v5-class chips
    run_case(2, 256, 8, 8, k3, tol=4e-2)
    # C=512: direct q/k projection path on every generation
    run_case(1, 512, 8, 8, k4, tol=4e-2)
    # N=400 (not a multiple of 128): padded key axis with in-kernel masking
    run_case(1, 32, 20, 20, k5, q_tile=128, kv_tile=128)
    print("KERNEL_OK")
</pallas_src>

<mosaic_0001>
module attributes {stable_mosaic.version = 11 : i64} {
  func.func @_msa_flash_kernel(%arg0: i32, %arg1: i32, %arg2: i32, %arg3: memref<1x32x64xbf16, #tpu.memory_space<vmem>>, %arg4: memref<1x64x32xbf16, #tpu.memory_space<vmem>>, %arg5: memref<1x32x64xbf16, #tpu.memory_space<vmem>>, %arg6: memref<32x32xbf16, #tpu.memory_space<vmem>>, %arg7: memref<32x1xf32, #tpu.memory_space<vmem>>, %arg8: memref<1xf32, #tpu.memory_space<smem>>, %arg9: memref<1x32x64xf32, #tpu.memory_space<vmem>>, %arg10: memref<32x64xbf16, #tpu.memory_space<vmem>>, %arg11: memref<1x64xf32, #tpu.memory_space<vmem>>, %arg12: memref<1x64xf32, #tpu.memory_space<vmem>>, %arg13: memref<32x64xf32, #tpu.memory_space<vmem>>) attributes {dimension_semantics = [#tpu.dimension_semantics<parallel>, #tpu.dimension_semantics<parallel>, #tpu.dimension_semantics<arbitrary>], iteration_bounds = array<i64: 2, 1, 1>, scalar_prefetch = 0 : i64, scratch_operands = 4 : i64, tpu.core_type = #tpu.core_type<tc>, window_params = [{transform_indices = @transform_0, window_bounds = array<i64: 1, 32, 64>}, {transform_indices = @transform_1, window_bounds = array<i64: 1, 64, 32>}, {transform_indices = @transform_2, window_bounds = array<i64: 1, 32, 64>}, {pipeline_mode = #tpu.pipeline_mode<synchronous>, transform_indices = @transform_3, window_bounds = array<i64: 32, 32>}, {pipeline_mode = #tpu.pipeline_mode<synchronous>, transform_indices = @transform_4, window_bounds = array<i64: 32, 1>}, {transform_indices = @transform_5, window_bounds = array<i64: 1>}, {transform_indices = @transform_6, window_bounds = array<i64: 1, 32, 64>}]} {
    %c0_i32 = arith.constant 0 : i32
    %0 = arith.cmpi eq, %arg2, %c0_i32 : i32
    %1 = arith.extui %0 : i1 to i32
    %c0_i32_0 = arith.constant 0 : i32
    %2 = arith.cmpi ne, %1, %c0_i32_0 : i32
    scf.if %2 {
      %c0_25 = arith.constant 0 : index
      %c0_26 = arith.constant 0 : index
      %36 = vector.load %arg6[%c0_25, %c0_26] : memref<32x32xbf16, #tpu.memory_space<vmem>>, vector<32x32xbf16>
      %c0_27 = arith.constant 0 : index
      %c0_28 = arith.constant 0 : index
      %c0_29 = arith.constant 0 : index
      %37 = vector.load %arg3[%c0_27, %c0_28, %c0_29] : memref<1x32x64xbf16, #tpu.memory_space<vmem>>, vector<1x32x64xbf16>
      %38 = vector.shape_cast %37 : vector<1x32x64xbf16> to vector<32x64xbf16>
      %cst_30 = arith.constant dense<0.000000e+00> : vector<32x64xf32>
      %39 = tpu.matmul %36, %38, %cst_30 {dimension_numbers = #tpu.dot_dimension_numbers<[1], [0], [0], [1], [0, 0, 1, 1], [], []>} : vector<32x32xbf16>, vector<32x64xbf16>, vector<32x64xf32> -> vector<32x64xf32>
      %c0_31 = arith.constant 0 : index
      %c0_32 = arith.constant 0 : index
      %40 = vector.load %arg7[%c0_31, %c0_32] : memref<32x1xf32, #tpu.memory_space<vmem>>, vector<32x1xf32>
      %41 = vector.broadcast %40 : vector<32x1xf32> to vector<32x64xf32>
      %42 = arith.addf %39, %41 : vector<32x64xf32>
      %43 = arith.truncf %42 : vector<32x64xf32> to vector<32x64xbf16>
      %c0_33 = arith.constant 0 : index
      %c0_34 = arith.constant 0 : index
      %44 = vector.load %arg10[%c0_33, %c0_34] : memref<32x64xbf16, #tpu.memory_space<vmem>>, vector<32x64xbf16>
      tpu.vector_store %arg10[%c0_33, %c0_34], %43 {strides = array<i32>} : memref<32x64xbf16, #tpu.memory_space<vmem>>, vector<32x64xbf16>,
      %cst_35 = arith.constant 0xFF800000 : f32
      %45 = vector.broadcast %cst_35 : f32 to vector<1x64xf32>
      %c0_36 = arith.constant 0 : index
      %c0_37 = arith.constant 0 : index
      %46 = vector.load %arg11[%c0_36, %c0_37] : memref<1x64xf32, #tpu.memory_space<vmem>>, vector<1x64xf32>
      tpu.vector_store %arg11[%c0_36, %c0_37], %45 {strides = array<i32>} : memref<1x64xf32, #tpu.memory_space<vmem>>, vector<1x64xf32>,
      %cst_38 = arith.constant 0.000000e+00 : f32
      %47 = vector.broadcast %cst_38 : f32 to vector<1x64xf32>
      %c0_39 = arith.constant 0 : index
      %c0_40 = arith.constant 0 : index
      %48 = vector.load %arg12[%c0_39, %c0_40] : memref<1x64xf32, #tpu.memory_space<vmem>>, vector<1x64xf32>
      tpu.vector_store %arg12[%c0_39, %c0_40], %47 {strides = array<i32>} : memref<1x64xf32, #tpu.memory_space<vmem>>, vector<1x64xf32>,
      %cst_41 = arith.constant 0.000000e+00 : f32
      %49 = vector.broadcast %cst_41 : f32 to vector<32x64xf32>
      %c0_42 = arith.constant 0 : index
      %c0_43 = arith.constant 0 : index
      %50 = vector.load %arg13[%c0_42, %c0_43] : memref<32x64xf32, #tpu.memory_space<vmem>>, vector<32x64xf32>
      tpu.vector_store %arg13[%c0_42, %c0_43], %49 {strides = array<i32>} : memref<32x64xf32, #tpu.memory_space<vmem>>, vector<32x64xf32>,
    } else {
    }
    %c0 = arith.constant 0 : index
    %c0_1 = arith.constant 0 : index
    %c0_2 = arith.constant 0 : index
    %3 = vector.load %arg4[%c0, %c0_1, %c0_2] : memref<1x64x32xbf16, #tpu.memory_space<vmem>>, vector<1x64x32xbf16>
    %4 = vector.shape_cast %3 : vector<1x64x32xbf16> to vector<64x32xbf16>
    %c0_3 = arith.constant 0 : index
    %c0_4 = arith.constant 0 : index
    %5 = vector.load %arg10[%c0_3, %c0_4] : memref<32x64xbf16, #tpu.memory_space<vmem>>, vector<32x64xbf16>
    %cst = arith.constant dense<0.000000e+00> : vector<64x64xf32>
    %6 = tpu.matmul %4, %5, %cst {dimension_numbers = #tpu.dot_dimension_numbers<[1], [0], [0], [1], [0, 0, 1, 1], [], []>} : vector<64x32xbf16>, vector<32x64xbf16>, vector<64x64xf32> -> vector<64x64xf32>
    %c0_5 = arith.constant 0 : index
    %c0_6 = arith.constant 0 : index
    %7 = vector.load %arg11[%c0_5, %c0_6] : memref<1x64xf32, #tpu.memory_space<vmem>>, vector<1x64xf32>
    %cst_7 = arith.constant dense<0xFF800000> : vector<64xf32>
    %8 = vector.multi_reduction <maximumf>, %6, %cst_7 [0] : vector<64x64xf32> to vector<64xf32>
    %9 = vector.shape_cast %8 : vector<64xf32> to vector<1x64xf32>
    %10 = arith.maximumf %7, %9 : vector<1x64xf32>
    %11 = arith.subf %7, %10 : vector<1x64xf32>
    %12 = math.exp %11 : vector<1x64xf32>
    %13 = vector.broadcast %10 : vector<1x64xf32> to vector<64x64xf32>
    %14 = arith.subf %6, %13 : vector<64x64xf32>
    %15 = arith.truncf %14 : vector<64x64xf32> to vector<64x64xbf16>
    %16 = math.exp %15 : vector<64x64xbf16>
    %c0_8 = arith.constant 0 : index
    %c0_9 = arith.constant 0 : index
    %17 = vector.load %arg12[%c0_8, %c0_9] : memref<1x64xf32, #tpu.memory_space<vmem>>, vector<1x64xf32>
    %18 = arith.mulf %12, %17 : vector<1x64xf32>
    %19 = arith.extf %16 : vector<64x64xbf16> to vector<64x64xf32>
    %cst_10 = arith.constant dense<0.000000e+00> : vector<64xf32>
    %20 = vector.multi_reduction <add>, %19, %cst_10 [0] : vector<64x64xf32> to vector<64xf32>
    %21 = vector.shape_cast %20 : vector<64xf32> to vector<1x64xf32>
    %22 = arith.addf %18, %21 : vector<1x64xf32>
    %c0_11 = arith.constant 0 : index
    %c0_12 = arith.constant 0 : index
    %23 = vector.load %arg12[%c0_11, %c0_12] : memref<1x64xf32, #tpu.memory_space<vmem>>, vector<1x64xf32>
    tpu.vector_store %arg12[%c0_11, %c0_12], %22 {strides = array<i32>} : memref<1x64xf32, #tpu.memory_space<vmem>>, vector<1x64xf32>,
    %c0_13 = arith.constant 0 : index
    %c0_14 = arith.constant 0 : index
    %c0_15 = arith.constant 0 : index
    %24 = vector.load %arg5[%c0_13, %c0_14, %c0_15] : memref<1x32x64xbf16, #tpu.memory_space<vmem>>, vector<1x32x64xbf16>
    %25 = vector.shape_cast %24 : vector<1x32x64xbf16> to vector<32x64xbf16>
    %cst_16 = arith.constant dense<0.000000e+00> : vector<32x64xf32>
    %26 = tpu.matmul %25, %16, %cst_16 {dimension_numbers = #tpu.dot_dimension_numbers<[1], [0], [0], [1], [0, 0, 1, 1], [], []>} : vector<32x64xbf16>, vector<64x64xbf16>, vector<32x64xf32> -> vector<32x64xf32>
    %c0_17 = arith.constant 0 : index
    %c0_18 = arith.constant 0 : index
    %27 = vector.load %arg13[%c0_17, %c0_18] : memref<32x64xf32, #tpu.memory_space<vmem>>, vector<32x64xf32>
    %28 = vector.broadcast %12 : vector<1x64xf32> to vector<32x64xf32>
    %29 = arith.mulf %28, %27 : vector<32x64xf32>
    %30 = arith.addf %29, %26 : vector<32x64xf32>
    %c0_19 = arith.constant 0 : index
    %c0_20 = arith.constant 0 : index
    %31 = vector.load %arg13[%c0_19, %c0_20] : memref<32x64xf32, #tpu.memory_space<vmem>>, vector<32x64xf32>
    tpu.vector_store %arg13[%c0_19, %c0_20], %30 {strides = array<i32>} : memref<32x64xf32, #tpu.memory_space<vmem>>, vector<32x64xf32>,
    %c0_21 = arith.constant 0 : index
    %c0_22 = arith.constant 0 : index
    %32 = vector.load %arg11[%c0_21, %c0_22] : memref<1x64xf32, #tpu.memory_space<vmem>>, vector<1x64xf32>
    tpu.vector_store %arg11[%c0_21, %c0_22], %10 {strides = array<i32>} : memref<1x64xf32, #tpu.memory_space<vmem>>, vector<1x64xf32>,
    %c0_i32_23 = arith.constant 0 : i32
    %33 = arith.cmpi eq, %arg2, %c0_i32_23 : i32
    %34 = arith.extui %33 : i1 to i32
    %c0_i32_24 = arith.constant 0 : i32
    %35 = arith.cmpi ne, %34, %c0_i32_24 : i32
    scf.if %35 {
      %c0_25 = arith.constant 0 : index
      %c0_26 = arith.constant 0 : index
      %36 = vector.load %arg12[%c0_25, %c0_26] : memref<1x64xf32, #tpu.memory_space<vmem>>, vector<1x64xf32>
      %37 = tpu.reciprocal %36 {approx = true} : vector<1x64xf32> -> vector<1x64xf32>
      %c0_27 = arith.constant 0 : index
      %c0_28 = arith.constant 0 : index
      %38 = vector.load %arg13[%c0_27, %c0_28] : memref<32x64xf32, #tpu.memory_space<vmem>>, vector<32x64xf32>
      %39 = vector.broadcast %37 : vector<1x64xf32> to vector<32x64xf32>
      %40 = arith.mulf %38, %39 : vector<32x64xf32>
      %c0_29 = arith.constant 0 : index
      %41 = memref.load %arg8[%c0_29] : memref<1xf32, #tpu.memory_space<smem>>
      %42 = vector.broadcast %41 : f32 to vector<32x64xf32>
      %43 = arith.mulf %42, %40 : vector<32x64xf32>
      %c0_30 = arith.constant 0 : index
      %c0_31 = arith.constant 0 : index
      %c0_32 = arith.constant 0 : index
      %44 = vector.load %arg3[%c0_30, %c0_31, %c0_32] : memref<1x32x64xbf16, #tpu.memory_space<vmem>>, vector<1x32x64xbf16>
      %45 = vector.shape_cast %44 : vector<1x32x64xbf16> to vector<32x64xbf16>
      %46 = arith.extf %45 : vector<32x64xbf16> to vector<32x64xf32>
      %47 = arith.addf %43, %46 : vector<32x64xf32>
      %c0_33 = arith.constant 0 : index
      %c0_34 = arith.constant 0 : index
      %c0_35 = arith.constant 0 : index
      %48 = vector.load %arg9[%c0_33, %c0_34, %c0_35] : memref<1x32x64xf32, #tpu.memory_space<vmem>>, vector<1x32x64xf32>
      %49 = vector.shape_cast %48 : vector<1x32x64xf32> to vector<32x64xf32>
      %50 = vector.shape_cast %47 : vector<32x64xf32> to vector<1x32x64xf32>
      tpu.vector_store %arg9[%c0_33, %c0_34, %c0_35], %50 {strides = array<i32>} : memref<1x32x64xf32, #tpu.memory_space<vmem>>, vector<1x32x64xf32>,
    } else {
    }
    return
  }
  func.func @transform_0(%arg0: i32, %arg1: i32, %arg2: i32) -> (i32, i32, i32) {
    %c0_i32 = arith.constant 0 : i32
    %c0_i32_0 = arith.constant 0 : i32
    return %arg0, %c0_i32, %arg1 : i32, i32, i32
  }
  func.func @transform_1(%arg0: i32, %arg1: i32, %arg2: i32) -> (i32, i32, i32) {
    %c0_i32 = arith.constant 0 : i32
    %c0_i32_0 = arith.constant 0 : i32
    return %arg0, %arg2, %c0_i32 : i32, i32, i32
  }
  func.func @transform_2(%arg0: i32, %arg1: i32, %arg2: i32) -> (i32, i32, i32) {
    %c0_i32 = arith.constant 0 : i32
    %c0_i32_0 = arith.constant 0 : i32
    return %arg0, %c0_i32, %arg2 : i32, i32, i32
  }
  func.func @transform_3(%arg0: i32, %arg1: i32, %arg2: i32) -> (i32, i32) {
    %c0_i32 = arith.constant 0 : i32
    %c0_i32_0 = arith.constant 0 : i32
    %c0_i32_1 = arith.constant 0 : i32
    return %c0_i32, %c0_i32_0 : i32, i32
  }
  func.func @transform_4(%arg0: i32, %arg1: i32, %arg2: i32) -> (i32, i32) {
    %c0_i32 = arith.constant 0 : i32
    %c0_i32_0 = arith.constant 0 : i32
    %c0_i32_1 = arith.constant 0 : i32
    return %c0_i32, %c0_i32_0 : i32, i32
  }
  func.func @transform_5(%arg0: i32, %arg1: i32, %arg2: i32) -> i32 {
    %c0_i32 = arith.constant 0 : i32
    %c0_i32_0 = arith.constant 0 : i32
    return %c0_i32 : i32
  }
  func.func @transform_6(%arg0: i32, %arg1: i32, %arg2: i32) -> (i32, i32, i32) {
    %c0_i32 = arith.constant 0 : i32
    %c0_i32_0 = arith.constant 0 : i32
    return %arg0, %c0_i32, %arg1 : i32, i32, i32
  }
}

</mosaic_0001>

<bundles_post_ra>
// kernel: tpu_custom_call.1
= control target key start
LH: loop header
LB: loop body
LE: loop exit
PB: predicated region body
PF: predicated region fallthrough
CT: control target
= control target key end

     0   :  { %s1501_s0 = inlined_call_operand.vmem [shape: bf16[2,32,64], index: 0, kind: input, shape index: {}]   ;;  %s1502_s1 = inlined_call_operand.vmem [shape: bf16[2,64,32], index: 1, kind: input, shape index: {}]   ;;  %s1503_s2 = inlined_call_operand.vmem [shape: bf16[2,32,64], index: 2, kind: input, shape index: {}]   ;;  %s1504_s3 = inlined_call_operand.vmem [shape: bf16[32,32], index: 3, kind: input, shape index: {}]   ;;  %s1505_s4 = inlined_call_operand.vmem [shape: f32[32,1], index: 4, kind: input, shape index: {}]   ;;  %s1506_s5 = inlined_call_operand.<no memory space> [shape: f32[1], index: 5, kind: input, shape index: {}]   ;;  %s1507_s6 = inlined_call_operand.hbm [shape: f32[2,32,64], index: 6, kind: output, shape index: {}]  }
   0x1   :  { %11 = sst [smem:[#allocation6]] %s1506_s5 }
   0x2   :  { %12 = vsyncpa [#allocation8], 0 }
   0x3   :  { %14 = vsyncpa [#allocation8 + $0x1], 0  ;;  %s1286_s23 = smov 0   ;;  %s1288_s24 = smov 0  }
   0x4   :  { %s1290_s25 = smov 0   ;;  %s1292_s26 = smov 0  }
   0x5   :  { %s1294_s27 = smov 0   ;;  %s1296_s28 = smov 0  }
   0x6 LB: > { %s972_s5 = sadd.s32 4294967295, %s1240_s28   ;;  %s973_s29 = sadd.s32 4294967294, %s1240_s28   ;;  %s1240_s28 = sphi %s1296_s28, %s20_s28   ;;  %s1236_s27 = sphi %s1294_s27, %s1514_s27   ;;  %s1232_s26 = sphi %s1292_s26, %s1513_s26   ;;  %s1228_s25 = sphi %s1290_s25, %s1512_s25   ;;  %s1224_s24 = sphi %s1288_s24, %s1511_s24   ;;  %s1220_s23 = sphi %s1286_s23, %s1510_s23  }
   0x7   : > { %s39_s30 = sadd.s32 1, %s1236_s27  ;;  %s195_s7 = sadd.s32 1, %s1228_s25 }
   0x8   : > { %p41_p0 = scmp.ge.s32.totalorder %s39_s30, 2  ;;  %p205_p1 = scmp.ne.s32.totalorder %s1228_s25, %s1224_s24 }
   0x9   : > { %p206_p2 = scmp.eq.s32.totalorder %s972_s5, 1  ;;  %p211_p3 = scmp.ne.s32.totalorder %s1224_s24, %s1220_s23 }
   0xa   : > { %s1516_s30 = smov (%p41_p0, %s39_s30), 0  ;;  %p212_p5 = scmp.eq.s32.totalorder %s973_s29, 1 }
   0xb   : > { %p1326_p4 = por %p206_p2, %p205_p1  ;;  %s190_s9 = ssub.s32 %s1236_s27, %s1516_s30 }
   0xc   : > { %p976_p6 = scmp.ge.s32.totalorder %s1240_s28, 1  ;;  %p193_p7 = scmp.eq.s32.totalorder %s190_s9, 0 }
   0xd   : > { %p1333_p8 = por %p212_p5, %p211_p3  ;;  %p274_p9 = scmp.lt.s32.totalorder %s1240_s28, 3 }
   0xe   : > { %s1339_s11 = scalar_select %p193_p7, %s1228_s25, %s195_s7  }
   0xf   : > { %p275_p10 = pnand %p976_p6, %p274_p9 }
  0x10   : > { %p324_p11 = scmp.lt.s32.totalorder (!%p275_p10), %s1232_s26, 1  ;;  %s1020_s7 = sshll.u32 (!%p275_p10), %s1232_s26, 9 }
  0x11   : > { %278 = sbr.rel (%p275_p10) target bundleno = 751 (0x2ef), region = 44  ;;  %s1448_s15 = scalar_lea.hbm (!%p275_p10), %s1507_s6, %s1020_s7 }
  0x12   : > { %s1245_s17 = smov (!%p275_p10), [#allocation7]  }
  0x13   : > { %s1168_s18 = sshll.u32 (!%p275_p10), %s1245_s17, 4  ;;  %s1169_s18 = int_to_ptr.vmem [resolvable:$false] %s1168_s18 }
  0x16   : > { %v1142_v0 = vld [vmem:[%s1504_s3] sm:$0xff]   ;;  %vm409_vm0 = vcmask 261120   ;;  %s1346_s14 = scalar_select %p324_p11, %s1232_s26, 1  ;;  %v365_v1 = vld [vmem:[%s1505_s4 + $0x10] sm:$0xff]  ;;  %v1242_v3 = vmov 0   ;;  %v366_v4 = vld [vmem:[%s1505_s4 + $0x18] sm:$0xff]  ;;  %v644_v59 = vlaneseq }
  0x17   : > { %1050 = vmatprep.mubr.msk.bf16.mxu0 %vm409_vm0, %v1142_v0  ;;  %v363_v2 = vld [vmem:[%s1505_s4] sm:$0xff]  ;;  %1138 = vset.pattern.permute.xlu0 %v1242_v3  ;;  %v364_v5 = vld [vmem:[%s1505_s4 + $0x8] sm:$0xff]  ;;  %vm481_vm1 = vcmask 519168   ;;  %vm486_vm2 = vcmask 516096   ;;  %v1243_v31 = vmov -inf   ;;  %vm489_vm3 = vcmask 523264  }
  0x18   : > { %1139 = vset.pattern.permute.xlu1 %v1242_v3  ;;  %s1013_s19 = sshll.u32 %s1346_s14, 4  ;;  %s1014_s20 = sshll.u32 %s1346_s14, 5  ;;  %379 = vperm.xlu0 %1138, %v365_v1   ;;  %v1143_v8 = vld [vmem:[%s1504_s3 + $0x8] sm:$0xff]   ;;  %487 = vst.msk [vmem:[#allocation3] sm:$0x1] %vm486_vm2, %v1243_v31  ;;  %v1244_v32 = vmov 0.0  }
  0x19   : > { %369 = vperm.xlu1 %1139, %v363_v2   ;;  %s1362_s5 = scalar_lea.vmem %s1501_s0, %s1013_s19  ;;  %s1374_s16 = scalar_lea.vmem %s1502_s1, %s1014_s20  ;;  %488 = vst.msk [vmem:[#allocation4] sm:$0x1] %vm486_vm2, %v1244_v32  ;;  %v645_v62 = vshrl.u32 %v644_v59, 7 }
  0x1a   : > { %v1140_v6 = vld [vmem:[%s1362_s5 + $0x8] sm:$0xff]   ;;  %v1141_v7 = vld [vmem:[%s1362_s5] sm:$0xff]   ;;  %v1148_v29 = vld [vmem:[%s1374_s16 + $0x10] sm:$0xff]   ;;  %492 = vst.msk [vmem:[#allocation5 + $0x10] sm:$0xff] %vm489_vm3, %v1244_v32  ;;  %s1404_s22 = scalar_lea.vmem %s1503_s2, %s1013_s19  ;;  %s818_s14 = sld [smem:[#allocation6]] }
  0x1b   : > { %1046 = vmatprep.subr.bf16.mxu0 %v1140_v6  ;;  %v1146_v9 = vld [vmem:[%s1374_s16] sm:$0xff]   ;;  %v1147_v28 = vld [vmem:[%s1374_s16 + $0x8] sm:$0xff]   ;;  %v1149_v30 = vld [vmem:[%s1374_s16 + $0x18] sm:$0xff]   ;;  %490 = vst.msk [vmem:[#allocation5] sm:$0xff] %vm489_vm3, %v1244_v32  ;;  %v1416_v2 = vsub.s32 0, %v645_v62  ;;  %s321_s19 = sand.u32 1, %s1224_s24  }
  0x1c   : > { %384 = vperm.xlu0 %1138, %v366_v4   ;;  %1047 = vmatpush3.bf16.msra.mxu0 %v1140_v6  ;;  %491 = vst.msk [vmem:[#allocation5 + $0x8] sm:$0xff] %vm489_vm3, %v1244_v32  ;;  %493 = vst.msk [vmem:[#allocation5 + $0x18] sm:$0xff] %vm489_vm3, %v1244_v32  ;;  %v1150_v33 = vld [vmem:[%s1404_s22] sm:$0xff]   ;;  %s977_s29 = sshll.u32 %s321_s19, 5  ;;  %s1456_s26 = scalar_lea.sflag [#allocation8], %s321_s19 }
  0x1d   : > { %374 = vperm.xlu1 %1139, %v364_v5   ;;  %1048 = vmatprep.subr.bf16.mxu0 %v1141_v7  ;;  %s1170_s20 = scalar_lea.vmem %s1169_s18, 1024 }
  0x1e   : > { %1058 = vmatprep.mubr.msk.bf16.mxu1 %vm409_vm0, %v1146_v9 }
  0x1f   : > { %v616_v0 = vld [vmem:[#allocation3] sm:$0x1] }
  0x20   : > { %1049 = vmatpush3.bf16.msra.mxu0 %v1141_v7 }
  0x23   : > { %1051 = vmatmul.mubr.msk.bf16.vlgmr.msra.gmra.mxu0 %vm409_vm0, %v1143_v8 }
  0x24   : > { %1074 = vmatprep.mubr.msk.bf16.mxu0 %vm489_vm3, %v1150_v33 }
  0x93   : > { %v380_v10 = vpop.permute.xlu0 %379 }
  0x94   : > { %v370_v11 = vpop.permute.xlu1 %369 }
  0x97   : > { %v385_v17 = vpop.permute.xlu0 %384 }
  0x98   : > { %v375_v21 = vpop.permute.xlu1 %374 }
  0xe3   : > { %v1052_v12 = vpop.f32.mrf.mxu0 }
  0xe4   : > { %v459_v13 = vadd.f32 %v1052_v12, %v380_v10 }
  0xe5   : > { %v450_v14 = vpop.f32.mrf.mxu0 }
  0xe6   : > { %v1018_v15 = vpack.c.bf16 %v459_v13, %v459_v13  ;;  %v451_v16 = vadd.f32 %v450_v14, %v370_v11 }
  0xe7   : > { %v1053_v18 = vpop.f32.mrf.mxu0 }
  0xe8   : > { %484 = vst.msk [vmem:[#allocation2 + $0x8] sm:$0xf] %vm481_vm1, %v1018_v15  ;;  %v1016_v19 = vpack.c.bf16 %v451_v16, %v451_v16  ;;  %v462_v20 = vadd.f32 %v1053_v18, %v385_v17 }
  0xe9   : > { %v453_v22 = vpop.f32.mrf.mxu0 }
  0xea   : > { %482 = vst.msk [vmem:[#allocation2] sm:$0xf] %vm481_vm1, %v1016_v19  ;;  %v1019_v23 = vpack.c.bf16 %v462_v20, %v462_v20  ;;  %v454_v24 = vadd.f32 %v453_v22, %v375_v21 }
  0xec   : > { %485 = vst.msk [vmem:[#allocation2 + $0xc] sm:$0xf] %vm481_vm1, %v1019_v23  ;;  %v1017_v25 = vpack.c.bf16 %v454_v24, %v454_v24 }
  0xee   : > { %483 = vst.msk [vmem:[#allocation2 + $0x4] sm:$0xf] %vm481_vm1, %v1017_v25 }
  0xf3   : > { %v1144_v26 = vld [vmem:[#allocation2 + $0x8] sm:$0xff]  }
  0xf4   : > { %1054 = vmatprep.subr.bf16.mxu1 %v1144_v26 }
  0xf5   : > { %v1145_v27 = vld [vmem:[#allocation2] sm:$0xff]   ;;  %1055 = vmatpush3.bf16.msra.mxu1 %v1144_v26 }
  0xf6   : > { %1056 = vmatprep.subr.bf16.mxu1 %v1145_v27 }
  0xf9   : > { %1057 = vmatpush3.bf16.msra.mxu1 %v1145_v27 }
  0xfc   : > { %1059 = vmatmul.mubr.msk.bf16.vlgmr.msra.gmra.mxu1 %vm409_vm0, %v1147_v28 }
  0xfd   : > { %1062 = vmatprep.mubr.msk.bf16.mxu1 %vm409_vm0, %v1148_v29 }
 0x104   : > { %1063 = vmatmul.mubr.msk.bf16.gmra.mxu1 %vm409_vm0, %v1149_v30 }
 0x1bc   : > { %v1060_v34 = vpop.f32.mrf.mxu1 }
 0x1bd   : > { %v620_v47 = vsel %vm489_vm3, %v1060_v34, -inf }
 0x1be   : > { %v585_v35 = vpop.f32.mrf.mxu1 }
 0x1bf   : > { %v618_v48 = vsel %vm489_vm3, %v585_v35, -inf }
 0x1c0   : > { %v1061_v36 = vpop.f32.mrf.mxu1 }
 0x1c1   : > { %v621_v41 = vsel %vm489_vm3, %v1061_v36, -inf }
 0x1c2   : > { %v588_v37 = vpop.f32.mrf.mxu1 }
 0x1c3   : > { %v619_v49 = vsel %vm489_vm3, %v588_v37, -inf }
 0x1c4   : > { %v1064_v38 = vpop.f32.mrf.mxu1 }
 0x1c5   : > { %v626_v42 = vsel %vm489_vm3, %v1064_v38, -inf }
 0x1c6   : > { %v601_v39 = vpop.f32.mrf.mxu1  ;;  %v627_v51 = vmax.f32 %v620_v47, %v626_v42 }
 0x1c7   : > { %v622_v43 = vsel %vm489_vm3, %v601_v39, -inf }
 0x1c8   : > { %v1065_v40 = vpop.f32.mrf.mxu1  ;;  %v623_v52 = vmax.f32 %v618_v48, %v622_v43 }
 0x1c9   : > { %v628_v44 = vsel %vm489_vm3, %v1065_v40, -inf }
 0x1ca   : > { %v629_v45 = vmax.f32 %v621_v41, %v628_v44  ;;  %v604_v46 = vpop.f32.mrf.mxu1 }
 0x1cb   : > { %v624_v50 = vsel %vm489_vm3, %v604_v46, -inf }
 0x1cc   : > { %v625_v53 = vmax.f32 %v619_v49, %v624_v50  ;;  %v631_v54 = vmax.f32 %v627_v51, %v629_v45  ;;  %v1151_v49 = vld [vmem:[%s1404_s22 + $0x8] sm:$0xff]  }
 0x1ce   : > { %v630_v55 = vmax.f32 %v623_v52, %v625_v53 }
 0x1d0   : > { %v632_v56 = vmax.f32 %v630_v55, %v631_v54 }
 0x1d2   : > { %v633_v57 = vrot.slane %v632_v56, 4 }
 0x1d4   : > { %v634_v58 = vmax.f32 %v632_v56, %v633_v57  ;;  %v673_v56 = vld [vmem:[#allocation4] sm:$0x1] }
 0x1d6   : > { %v635_v60 = vrot.slane %v634_v58, 2 }
 0x1d8   : > { %v636_v61 = vmax.f32 %v634_v58, %v635_v60 }
 0x1da   : > { %v637_v63 = vrot.slane %v636_v61, 1 }
 0x1dc   : > { %v638_v1 = vmax.f32 %v636_v61, %v637_v63  ;;  %v778_v63 = vld [vmem:[#allocation5 + $0x10] sm:$0xff] }
 0x1de   : > { %v639_v3 = vmax.f32 %v616_v0, %v638_v1 }
 0x1e0   : > { %v647_v4 = vrot.slane %v639_v3, %v1416_v2  ;;  %798 = vst.msk [vmem:[#allocation3] sm:$0x1] %vm486_vm2, %v639_v3  ;;  %v640_v31 = vsub.f32 %v616_v0, %v639_v3  ;;  %v776_v0 = vld [vmem:[#allocation5] sm:$0xff] }
 0x1e2   : > { %v649_v5 = vsub.f32 %v585_v35, %v647_v4  ;;  %v650_v6 = vsub.f32 %v588_v37, %v647_v4  ;;  %v651_v7 = vsub.f32 %v1060_v34, %v647_v4  ;;  %v652_v8 = vsub.f32 %v1061_v36, %v647_v4 }
 0x1e3   : > { %v653_v9 = vsub.f32 %v601_v39, %v647_v4  ;;  %v654_v10 = vsub.f32 %v604_v46, %v647_v4  ;;  %v655_v11 = vsub.f32 %v1064_v38, %v647_v4  ;;  %v656_v12 = vsub.f32 %v1065_v40, %v647_v4  ;;  %v779_v4 = vld [vmem:[#allocation5 + $0x18] sm:$0xff] }
 0x1e4   : > { %v657_v13 = vpack.c.bf16 %v650_v6, %v649_v5  ;;  %v658_v14 = vpack.c.bf16 %v652_v8, %v651_v7  ;;  %v641_v38 = vmul.f32 1.442695, %v640_v31  ;;  %v777_v8 = vld [vmem:[#allocation5 + $0x8] sm:$0xff] }
 0x1e5   : > { %v659_v15 = vpack.c.bf16 %v654_v10, %v653_v9  ;;  %v660_v16 = vpack.c.bf16 %v656_v12, %v655_v11 }
 0x1e6   : > { %v662_v17 = vmul.bf16 1069105081, %v657_v13  ;;  %v665_v18 = vmul.bf16 1069105081, %v658_v14 }
 0x1e7   : > { %v668_v19 = vmul.bf16 1069105081, %v659_v15  ;;  %v671_v20 = vmul.bf16 1069105081, %v660_v16 }
 0x1e8   : > { %1152 = vpow.bf16 %v662_v17  ;;  %v1029_v17 = vld [vmem:[%s1362_s5 + $0x8] sm:$0xff]  }
 0x1e9   : > { %1154 = vpow.bf16 %v665_v18 }
 0x1ea   : > { %1156 = vpow.bf16 %v668_v19  ;;  %v1022_v19 = vld [vmem:[%s1362_s5] sm:$0xff]   ;;  %s323_s5 = scalar_lea.vmem [#allocation7], %s977_s29 }
 0x1eb   : > { %1158 = vpow.bf16 %v671_v20  ;;  %s855_s9 = sshll.u32 %s323_s5, 4  ;;  %s1450_s9 = int_to_ptr.vmem [resolvable:$true] %s855_s9 }
 0x1ec   : > { %1160 = vpow2.f32 %v641_v38  ;;  %s1164_s16 = scalar_lea.vmem %s1450_s9, 512  ;;  %p1171_p1 = scmp.lt.s32.totalorder %s1450_s9, %s1169_s18 }
 0x1ed   : > { %p1165_p12 = scmp.ne.s32.totalorder %s1450_s9, %s1164_s16  ;;  %p1172_p2 = scmp.lt.s32.totalorder %s1170_s20, %s1164_s16 }
 0x1ef   : > { %p1166_p13 = pnand %p1165_p12, %p1326_p4  ;;  %p1173_p3 = por %p1172_p2, %p1171_p1 }
 0x1f1   : > { %p1167_p0 = pneg %p1166_p13 }
 0x1f3   : > { %p1174_p5 = pnand %p1173_p3, %p1167_p0 }
 0x1f6   : > { %v1153_v21 = vpop.eup %1152 }
 0x1f7   : > { %v1155_v22 = vpop.eup %1154  ;;  %v675_v23 = vunpack.c.l.bf16 %v1153_v21  ;;  %v676_v24 = vunpack.c.h.bf16 %v1153_v21 }
 0x1f8   : > { %v1157_v25 = vpop.eup %1156  ;;  %v677_v26 = vunpack.c.l.bf16 %v1155_v22  ;;  %v678_v28 = vunpack.c.h.bf16 %v1155_v22 }
 0x1f9   : > { %v1159_v27 = vpop.eup %1158  ;;  %v683_v29 = vsel %vm489_vm3, %v675_v23, 0.0  ;;  %v684_v30 = vsel %vm489_vm3, %v676_v24, 0.0  ;;  %v679_v33 = vunpack.c.l.bf16 %v1157_v25  ;;  %v680_v36 = vunpack.c.h.bf16 %v1157_v25 }
 0x1fa   : > { %1066 = vmatprep.subr.bf16.mxu0 %v1159_v27  ;;  %v685_v32 = vadd.f32 %v684_v30, %v683_v29  ;;  %v686_v34 = vsel %vm489_vm3, %v677_v26, 0.0  ;;  %v688_v37 = vsel %vm489_vm3, %v678_v28, 0.0  ;;  %v681_v40 = vunpack.c.l.bf16 %v1159_v27  ;;  %v1161_v55 = vpop.eup %1160 }
 0x1fb   : > { %1067 = vmatpush3.bf16.msra.mxu0 %v1159_v27  ;;  %v690_v41 = vsel %vm489_vm3, %v679_v33, 0.0  ;;  %v682_v43 = vunpack.c.h.bf16 %v1159_v27  ;;  %v692_v44 = vsel %vm489_vm3, %v680_v36, 0.0  ;;  %v674_v58 = vmul.f32 %v1161_v55, %v673_v56 }
 0x1fc   : > { %1068 = vmatprep.subr.bf16.mxu0 %v1157_v25  ;;  %v687_v35 = vadd.f32 %v686_v34, %v685_v32  ;;  %v694_v46 = vsel %vm489_vm3, %v681_v40, 0.0  ;;  %v784_v62 = vrot.slane %v1161_v55, %v1416_v2  ;;  %v1028_v29 = vunpack.c.h.bf16 %v1029_v17 }
 0x1fd   : > { %v696_v48 = vsel %vm489_vm3, %v682_v43, 0.0  ;;  %v1024_v34 = vunpack.c.h.bf16 %v1022_v19 }
 0x1fe   : > { %v689_v39 = vadd.f32 %v688_v37, %v687_v35  ;;  %v788_v1 = vmul.f32 %v784_v62, %v778_v63  ;;  %v786_v6 = vmul.f32 %v784_v62, %v776_v0  ;;  %v789_v10 = vmul.f32 %v784_v62, %v779_v4 }
 0x1ff   : > { %1069 = vmatpush3.bf16.msra.mxu0 %v1157_v25  ;;  %v787_v13 = vmul.f32 %v784_v62, %v777_v8  ;;  %v1023_v25 = vunpack.c.l.bf16 %v1022_v19 }
 0x200   : > { %1070 = vmatprep.subr.bf16.mxu0 %v1155_v22  ;;  %v691_v42 = vadd.f32 %v690_v41, %v689_v39 }
 0x202   : > { %v693_v45 = vadd.f32 %v692_v44, %v691_v42 }
 0x203   : > { %1071 = vmatpush3.bf16.msra.mxu0 %v1155_v22  ;;  %v1027_v22 = vunpack.c.l.bf16 %v1029_v17 }
 0x204   : > { %1072 = vmatprep.subr.bf16.mxu0 %v1153_v21  ;;  %v695_v47 = vadd.f32 %v694_v46, %v693_v45 }
 0x206   : > { %v697_v50 = vadd.f32 %v696_v48, %v695_v47 }
 0x207   : > { %1073 = vmatpush3.bf16.msra.mxu0 %v1153_v21  ;;  %v819_v21 = vstv %s818_s14 }
 0x208   : > { %v698_v51 = vrot.slane %v697_v50, 4 }
 0x20a   : > { %1075 = vmatmul.mubr.msk.bf16.vlgmr.msra.gmra.mxu0 %vm489_vm3, %v1151_v49  ;;  %v699_v52 = vadd.f32 %v698_v51, %v697_v50 }
 0x20c   : > { %v700_v53 = vrot.slane %v699_v52, 2 }
 0x20e   : > { %v701_v54 = vadd.f32 %v700_v53, %v699_v52 }
 0x210   : > { %v702_v57 = vrot.slane %v701_v54, 1 }
 0x212   : > { %v703_v59 = vadd.f32 %v702_v57, %v701_v54 }
 0x214   : > { %v704_v60 = vadd.f32 %v703_v59, %v674_v58 }
 0x216   : > { %706 = vst.msk [vmem:[#allocation4] sm:$0x1] %vm486_vm2, %v704_v60 }
 0x21d   : > { %v802_v61 = vld [vmem:[#allocation4] sm:$0x1] }
 0x21e   : > { %1162 = vrcp.f32 %v802_v61 }
 0x22b   : > { %v1163_v14 = vpop.eup %1162 }
 0x22c   : > { %v812_v18 = vrot.slane %v1163_v14, %v1416_v2 }
 0x2ca   : > { %v1076_v3 = vpop.f32.mrf.mxu0 }
 0x2cb   : > { %v792_v5 = vadd.f32 %v1076_v3, %v788_v1 }
 0x2cc   : > { %v761_v7 = vpop.f32.mrf.mxu0 }
 0x2cd   : > { %796 = vst.msk [vmem:[#allocation5 + $0x10] sm:$0xff] %vm489_vm3, %v792_v5  ;;  %v790_v9 = vadd.f32 %v786_v6, %v761_v7 }
 0x2ce   : > { %v1077_v11 = vpop.f32.mrf.mxu0 }
 0x2cf   : > { %794 = vst.msk [vmem:[#allocation5] sm:$0xff] %vm489_vm3, %v790_v9  ;;  %v793_v12 = vadd.f32 %v1077_v11, %v789_v10 }
 0x2d0   : > { %v764_v15 = vpop.f32.mrf.mxu0 }
 0x2d1   : > { %797 = vst.msk [vmem:[#allocation5 + $0x18] sm:$0xff] %vm489_vm3, %v793_v12  ;;  %v791_v16 = vadd.f32 %v787_v13, %v764_v15 }
 0x2d3   : > { %795 = vst.msk [vmem:[#allocation5 + $0x8] sm:$0xff] %vm489_vm3, %v791_v16 }
 0x2d4   : > { %v806_v20 = vld [vmem:[#allocation5 + $0x10] sm:$0xff] }
 0x2d5   : > { %v816_v23 = vmul.f32 %v812_v18, %v806_v20 }
 0x2d6   : > { %v804_v24 = vld [vmem:[#allocation5] sm:$0xff] }
 0x2d7   : > { %v814_v26 = vmul.f32 %v812_v18, %v804_v24  ;;  %v822_v27 = vmul.f32 %v819_v21, %v816_v23 }
 0x2d8   : > { %v807_v28 = vld [vmem:[#allocation5 + $0x18] sm:$0xff] }
 0x2d9   : > { %v817_v30 = vmul.f32 %v812_v18, %v807_v28  ;;  %v820_v31 = vmul.f32 %v819_v21, %v814_v26  ;;  %v834_v32 = vadd.f32 %v1027_v22, %v822_v27 }
 0x2da   : > { %v805_v33 = vld [vmem:[#allocation5 + $0x8] sm:$0xff] }
 0x2db   : > { %v815_v2 = vmul.f32 %v812_v18, %v805_v33  ;;  %v823_v35 = vmul.f32 %v819_v21, %v817_v30  ;;  %v832_v36 = vadd.f32 %v1023_v25, %v820_v31  ;;  %838 = vst.msk [vmem:[%s323_s5 + $0x10] sm:$0xff] %vm489_vm3, %v834_v32 }
 0x2dd   : > { %v821_v37 = vmul.f32 %v819_v21, %v815_v2  ;;  %v835_v38 = vadd.f32 %v1028_v29, %v823_v35  ;;  %836 = vst.msk [vmem:[%s323_s5] sm:$0xff] %vm489_vm3, %v832_v36 }
 0x2df   : > { %v833_v39 = vadd.f32 %v1024_v34, %v821_v37  ;;  %839 = vst.msk [vmem:[%s323_s5 + $0x18] sm:$0xff] %vm489_vm3, %v835_v38 }
 0x2e1   : > { %837 = vst.msk [vmem:[%s323_s5 + $0x8] sm:$0xff] %vm489_vm3, %v833_v39 }
 0x2e2   : > { %1177 = shalt.err (!%p1174_p5)
}
 0x2e3   : > { %s1178_s21 = scalar_lea.hbm %s1448_s15, 512  ;;  %s1182_s19 = scalar_lea.hbm %s1507_s6, 1024 }
 0x2e4   : > { %p1179_p6 = scmp.ne.s32.totalorder %s1448_s15, %s1178_s21  ;;  %p1183_p10 = scmp.lt.s32.totalorder %s1448_s15, %s1507_s6 }
 0x2e5   : > { %p1184_p11 = scmp.lt.s32.totalorder %s1182_s19, %s1178_s21 }
 0x2e6   : > { %p1180_p7 = pnand %p1179_p6, %p1326_p4 }
 0x2e7   : > { %p1185_p12 = por %p1184_p11, %p1183_p10 }
 0x2e8   : > { %p1181_p9 = pneg %p1180_p7 }
 0x2ea   : > { %p1186_p13 = pnand %p1185_p12, %p1181_p9 }
 0x2ec   : > { %1189 = shalt.err (!%p1186_p13)
}
 0x2ed   : > { %s1246_s7 = smov 128   ;;  %s1247_s12 = smov 8  }
 0x2ee   : > { %1078 = dma.vmem_to_hbm [thread:$0]  (%p1326_p4), %s1450_s9, 512, %s1448_s15, %s1456_s26, %s1246_s7, %s1246_s7, %s1247_s12  }
 0x2ef PF: > { %p1084_p0 = scmp.ge.s32.totalorder %s1240_s28, 2  ;;  %s870_s13 = sand.u32 1, %s1220_s23  }
 0x2f0   : > { %s871_s16 = scalar_lea.sflag [#allocation8], %s870_s13 }
 0x2f1   : > { %p1081_p1 = pnand %p1084_p0, %p1333_p8 }
 0x2f3   : > { %p1082_p2 = pneg %p1081_p1 }
 0x2f5   : > { %1215 = dma.done.wait (%p1082_p2), %s871_s16, 512  }
 0x2f6   : > { %1217 = vsyncadd (%p1082_p2), %s871_s16, 4294966784  ;;  %s20_s28 = sadd.s32 1, %s1240_s28   ;;  %s1510_s23 = smov %s1224_s24 }
 0x2f7   : > { %p17_p3 = scmp.ge.s32.totalorder %s20_s28, 4   ;;  %s1511_s24 = smov %s1228_s25 }
 0x2f8   : > { %s1512_s25 = smov %s1339_s11  ;;  %s1513_s26 = smov %s1236_s27 }
 0x2f9   : > { %s1514_s27 = smov %s1516_s30  ;;  %19 = sbr.rel (!%p17_p3) target bundleno = 6 (0x6), region = 93 }
 0x2fe   :  { %876 = vsyncpa [#allocation8], 1 }
 0x2ff   :  { %878 = vsyncpa [#allocation8 + $0x1], 1 }

</bundles_post_ra>
